<compile_context>
chip_gen: v5e
topology: v5e:2x2
jax: 0.10.0
libtpu: 0.0.40
codegen_flags: <defaults>
</compile_context>

<pallas_src>
import functools

import jax
import jax.numpy as jnp
from jax import lax
from jax.experimental import pallas as pl
from jax.experimental.pallas import tpu as pltpu


# ----------------------------------------------------------------------------
# One-time probe for pltpu.roll's direction convention.  We need
#     shifted[:, p] = x[:, p + off]
# which is shift = -off under np.roll semantics and shift = +off otherwise.
# ----------------------------------------------------------------------------
def _roll_probe_kernel(x_ref, o_ref):
    o_ref[...] = pltpu.roll(x_ref[...], shift=1, axis=1)


@functools.lru_cache(maxsize=None)
def _roll_matches_np_roll():
    x = lax.broadcasted_iota(jnp.float32, (8, 128), 1)
    out = pl.pallas_call(
        _roll_probe_kernel,
        out_shape=jax.ShapeDtypeStruct((8, 128), jnp.float32),
    )(x)
    # np.roll semantics: out[:, 0] == x[:, -1] == 127
    return bool(float(out[0, 0]) == 127.0)


# ----------------------------------------------------------------------------
# Fused Pallas kernel: whole Bottleneck block for one image per grid step.
# All tensors are (channels, H*W): channels on sublanes, pixels on lanes.
# ----------------------------------------------------------------------------
def _bottleneck_kernel(x_ref, w1_ref, b1_ref, w3_ref, b2_ref, wf_ref, bo_ref,
                       o_ref, *, H, W, np_roll):
    HW = H * W
    x = x_ref[...]                                                # (Cin, HW)

    # ---- conv1_0 (1x1) + bn1 (folded) + relu --------------------------------
    h1 = jnp.dot(w1_ref[...], x, preferred_element_type=jnp.float32)
    h1 = jnp.maximum(h1 + b1_ref[...], 0.0)                       # (Cmid, HW)

    # ---- 3x3 taps: roll the flattened pixel (lane) axis by dy*W+dx and mask
    #      the image border (the mask also kills every wrapped-around lane) ---
    row = lax.broadcasted_iota(jnp.int32, (1, HW), 1) // W
    col = lax.broadcasted_iota(jnp.int32, (1, HW), 1) % W
    taps = []
    for dy in (-1, 0, 1):
        for dx in (-1, 0, 1):
            off = dy * W + dx
            if off == 0:
                shifted = h1
            else:
                amt = ((-off) if np_roll else off) % HW
                shifted = pltpu.roll(h1, shift=amt, axis=1)
            conds = []
            if dy < 0:
                conds.append(row >= -dy)
            elif dy > 0:
                conds.append(row < H - dy)
            if dx < 0:
                conds.append(col >= -dx)
            elif dx > 0:
                conds.append(col < W - dx)
            if conds:
                m = conds[0]
                for c in conds[1:]:
                    m = jnp.logical_and(m, c)
                shifted = jnp.where(m, shifted, 0.0)
            taps.append(shifted)
    t = jnp.concatenate(taps, axis=0)                             # (9*Cmid, HW)

    # ---- grouped 3x3 conv (block-diagonal weight -> ONE matmul) + bn2 + relu
    h2 = jnp.dot(w3_ref[...], t, preferred_element_type=jnp.float32)
    h2 = jnp.maximum(h2 + b2_ref[...], 0.0)                       # (Cmid, HW)

    # ---- conv1_1 + 1x1 shortcut fused into one K=(Cmid+Cin) matmul;
    #      bn3 and bn0 folded into wf/bo -------------------------------------
    k = jnp.concatenate([h2, x], axis=0)                          # (Cmid+Cin, HW)
    y = jnp.dot(wf_ref[...], k, preferred_element_type=jnp.float32) + bo_ref[...]
    o_ref[...] = jnp.maximum(y, 0.0).astype(o_ref.dtype)          # (Cout, HW)


# ----------------------------------------------------------------------------
# Glue (pure JAX): BN folding, parameter packing, wrapper
# ----------------------------------------------------------------------------
def fold_bn(gamma, beta, mean, var, eps=1e-5):
    scale = gamma / jnp.sqrt(var + eps)
    return scale, beta - mean * scale


def bottleneck_forward_pallas(x_nchw, p, *, stride, cardinality):
    del cardinality  # group structure is baked into the block-diagonal w3t
    n, cin, h, w = x_nchw.shape
    hw = h * w
    inner = p["w1t"].shape[0]
    out_c = p["w2t"].shape[0]

    s1, b1 = fold_bn(*p["bn1"])
    s2, b2 = fold_bn(*p["bn2"])
    s3, b3 = fold_bn(*p["bn3"])
    s0, b0 = fold_bn(*p["bn0"])

    # Fold BN scales into the (Cout, K) weights (per output row); bn3 and bn0
    # compose across the residual add:
    #   relu( s0*( s3*(W2 h2) + b3 + Ws x ) + b0 )
    #     = relu( (W2*s3*s0) h2 + (Ws*s0) x + (b3*s0 + b0) )
    w1f = p["w1t"] * s1[:, None]                                   # (inner, cin)
    w3f = p["w3t"] * s2[:, None]                                   # (inner, 9*inner)
    wff = jnp.concatenate([p["w2t"] * (s3 * s0)[:, None],
                           p["wst"] * s0[:, None]], axis=1)        # (out_c, inner+cin)
    b1c = b1[:, None]
    b2c = b2[:, None]
    boc = (b3 * s0 + b0)[:, None]

    x2d = x_nchw.reshape(n, cin, hw)                               # NC(HW): no transpose

    kernel = functools.partial(_bottleneck_kernel, H=h, W=w,
                               np_roll=_roll_matches_np_roll())
    vmem = pltpu.MemorySpace.VMEM
    out = pl.pallas_call(
        kernel,
        out_shape=jax.ShapeDtypeStruct((n, out_c, hw), jnp.float32),
        grid=(n,),
        in_specs=[
            pl.BlockSpec((None, cin, hw), lambda i: (i, 0, 0)),
            pl.BlockSpec(memory_space=vmem),   # w1f
            pl.BlockSpec(memory_space=vmem),   # b1
            pl.BlockSpec(memory_space=vmem),   # w3f
            pl.BlockSpec(memory_space=vmem),   # b2
            pl.BlockSpec(memory_space=vmem),   # wff
            pl.BlockSpec(memory_space=vmem),   # bo
        ],
        out_specs=pl.BlockSpec((None, out_c, hw), lambda i: (i, 0, 0)),
        compiler_params=pltpu.CompilerParams(
            dimension_semantics=("parallel",)),
    )(x2d, w1f, b1c, w3f, b2c, wff, boc)

    out = out.reshape(n, out_c, h, w)
    if stride != 1:
        # Exact: stride-s 1x1/3x3 conv outputs are the stride-1 outputs
        # sub-sampled at (r % s == 0, c % s == 0).
        out = out[:, :, ::stride, ::stride]
    return out


# ----------------------------------------------------------------------------
# Pure-JAX reference (mirrors the PyTorch forward, BN in eval mode)
# ----------------------------------------------------------------------------
def _conv2d_nchw(x, w, stride=1, padding=0, groups=1):
    return lax.conv_general_dilated(
        x, w, window_strides=(stride, stride),
        padding=[(padding, padding), (padding, padding)],
        dimension_numbers=("NCHW", "OIHW", "NCHW"),
        feature_group_count=groups,
        precision=lax.Precision.HIGHEST)


def _bn_eval(x, gamma, beta, mean, var, eps=1e-5):
    inv = (gamma / jnp.sqrt(var + eps))[None, :, None, None]
    return (x - mean[None, :, None, None]) * inv + beta[None, :, None, None]


def bottleneck_forward_ref(x, raw, *, stride, cardinality):
    out = _conv2d_nchw(x, raw["w_conv1_0"])
    out = jnp.maximum(_bn_eval(out, *raw["bn1"]), 0.0)
    out = _conv2d_nchw(out, raw["w_conv3_0"], stride=stride, padding=1,
                       groups=cardinality)
    out = jnp.maximum(_bn_eval(out, *raw["bn2"]), 0.0)
    out = _conv2d_nchw(out, raw["w_conv1_1"])
    out = _bn_eval(out, *raw["bn3"])
    out = out + _conv2d_nchw(x, raw["w_shortcut"], stride=stride)
    return jnp.maximum(_bn_eval(out, *raw["bn0"]), 0.0)


# ----------------------------------------------------------------------------
# Deterministic parameter construction + packing for the transposed layout
# ----------------------------------------------------------------------------
def make_params(key, in_planes, bottleneck_width, cardinality, expansion):
    inner = cardinality * bottleneck_width
    out_c = inner * expansion
    bw = bottleneck_width
    keys = jax.random.split(key, 8)

    def bn_params(k, c):
        k1, k2, k3, k4 = jax.random.split(k, 4)
        gamma = 1.0 + 0.1 * jax.random.normal(k1, (c,), jnp.float32)
        beta = 0.1 * jax.random.normal(k2, (c,), jnp.float32)
        mean = 0.1 * jax.random.normal(k3, (c,), jnp.float32)
        var = 0.5 + jnp.abs(jax.random.normal(k4, (c,), jnp.float32))
        return (gamma, beta, mean, var)

    raw = {
        "w_conv1_0": 0.2 * jax.random.normal(keys[0], (inner, in_planes, 1, 1), jnp.float32),
        "w_conv3_0": 0.2 * jax.random.normal(keys[1], (inner, bw, 3, 3), jnp.float32),
        "w_conv1_1": 0.2 * jax.random.normal(keys[2], (out_c, inner, 1, 1), jnp.float32),
        "w_shortcut": 0.2 * jax.random.normal(keys[3], (out_c, in_planes, 1, 1), jnp.float32),
        "bn1": bn_params(keys[4], inner),
        "bn2": bn_params(keys[5], inner),
        "bn3": bn_params(keys[6], out_c),
        "bn0": bn_params(keys[7], out_c),
    }

    # Channels-on-sublanes packing: 1x1 convs -> (Cout, Cin) matrices; grouped
    # 3x3 -> (inner, 9*inner) block-diagonal, tap-major along K with tap index
    # t = (dy+1)*3 + (dx+1), matching the in-kernel tap ordering.
    w3t = jnp.zeros((inner, 9, inner), jnp.float32)
    for g in range(cardinality):
        blk = raw["w_conv3_0"][g * bw:(g + 1) * bw]                 # (o, i, 3, 3)
        blk = jnp.transpose(blk, (0, 2, 3, 1)).reshape(bw, 9, bw)   # (o, tap, i)
        w3t = w3t.at[g * bw:(g + 1) * bw, :, g * bw:(g + 1) * bw].set(blk)

    packed = {
        "w1t": raw["w_conv1_0"][:, :, 0, 0],     # (inner, in_planes)
        "w3t": w3t.reshape(inner, 9 * inner),    # (inner, 9*inner)
        "w2t": raw["w_conv1_1"][:, :, 0, 0],     # (out_c, inner)
        "wst": raw["w_shortcut"][:, :, 0, 0],    # (out_c, in_planes)
        "bn1": raw["bn1"], "bn2": raw["bn2"], "bn3": raw["bn3"], "bn0": raw["bn0"],
    }
    return raw, packed


# ----------------------------------------------------------------------------
if __name__ == "__main__":
    # Module config: Bottleneck(in_planes=8, bottleneck_width=4, cardinality=4,
    #                           stride=1, expansion=2)  -> inner=16, out=32
    in_planes, bottleneck_width, cardinality, stride, expansion = 8, 4, 4, 1, 2
    N, H, W = 2, 16, 16

    key = jax.random.PRNGKey(0)
    kx, kp = jax.random.split(key)
    x = jax.random.normal(kx, (N, in_planes, H, W), jnp.float32)   # NCHW like PyTorch

    raw, packed = make_params(kp, in_planes, bottleneck_width, cardinality, expansion)

    out = bottleneck_forward_pallas(x, packed, stride=stride, cardinality=cardinality)
    out = jax.block_until_ready(out)

    ref = bottleneck_forward_ref(x, raw, stride=stride, cardinality=cardinality)
    ref = jax.block_until_ready(ref)

    assert out.shape == ref.shape == (N, cardinality * bottleneck_width * expansion, H, W)
    max_err = float(jnp.max(jnp.abs(out - ref)))
    assert jnp.allclose(out, ref, atol=2e-3, rtol=2e-3), max_err

    print("KERNEL_OK")
</pallas_src>

<mosaic_0001>
module attributes {stable_mosaic.version = 11 : i64} {
  func.func @_roll_probe_kernel(%arg0: memref<8x128xf32, #tpu.memory_space<vmem>>, %arg1: memref<8x128xf32, #tpu.memory_space<vmem>>) attributes {dimension_semantics = [], scalar_prefetch = 0 : i64, scratch_operands = 0 : i64, tpu.core_type = #tpu.core_type<tc>} {
    %c0 = arith.constant 0 : index
    %c0_0 = arith.constant 0 : index
    %0 = vector.load %arg0[%c0, %c0_0] : memref<8x128xf32, #tpu.memory_space<vmem>>, vector<8x128xf32>
    %c1_i32 = arith.constant 1 : i32
    %1 = tpu.dynamic_rotate %0 by %c1_i32 dim 1 : vector<8x128xf32>, i32 -> vector<8x128xf32>
    %c0_1 = arith.constant 0 : index
    %c0_2 = arith.constant 0 : index
    %2 = vector.load %arg1[%c0_1, %c0_2] : memref<8x128xf32, #tpu.memory_space<vmem>>, vector<8x128xf32>
    tpu.vector_store %arg1[%c0_1, %c0_2], %1 {strides = array<i32>} : memref<8x128xf32, #tpu.memory_space<vmem>>, vector<8x128xf32>,
    return
  }
}

</mosaic_0001>

<bundles_post_ra>
// kernel: tpu_custom_call.1
= control target key start
LH: loop header
LB: loop body
LE: loop exit
PB: predicated region body
PF: predicated region fallthrough
CT: control target
= control target key end

     0   :  { %6 = vsyncpa [#allocation3], 0  ;;  %s118_s0 = inlined_call_operand.hbm [shape: f32[8,128], index: 0, kind: input, shape index: {}]   ;;  %s119_s1 = inlined_call_operand.hbm [shape: f32[8,128], index: 1, kind: output, shape index: {}]  }
   0x1   :  { %7 = vsyncpa [#allocation4], 0  ;;  %s13_s8 = sshll.u32 %s118_s0, 4  ;;  %s99_s9 = smov [#allocation2]   ;;  %s14_s8 = int_to_ptr.hbm [resolvable:$true] %s13_s8 }
   0x2   :  { %s15_s10 = sshll.u32 %s99_s9, 4  ;;  %s16_s10 = int_to_ptr.vmem [resolvable:$true] %s15_s10 }
   0x3   :  { %18 = dma.hbm_to_vmem [thread:$0]  %s14_s8, 128, %s16_s10, [#allocation3]  }
   0x4   :  { %95 = dma.done.wait [#allocation3], 128  }
   0x5   :  { %96 = vsyncadd [#allocation3], 4294967168  ;;  %v23_v0 = vld [vmem:[#allocation2] sm:$0xff]  ;;  %s100_s11 = smov 1   ;;  %s101_s12 = smov [#allocation5]  }
   0x6   :  { %24 = vrot.lane.b32.xlu0 %v23_v0, %s100_s11  ;;  %s32_s13 = sshll.u32 %s101_s12, 4  ;;  %s34_s16 = sshll.u32 %s119_s1, 4  ;;  %s33_s13 = int_to_ptr.vmem [resolvable:$true] %s32_s13  ;;  %s35_s16 = int_to_ptr.hbm [resolvable:$true] %s34_s16 }
  0x78   :  { %v25_v1 = vpop.permute.xlu0 %24 }
  0x79   :  { %26 = vst [vmem:[#allocation5] sm:$0xff] %v25_v1 }
  0x7a   :  { %37 = dma.vmem_to_hbm [thread:$0]  %s33_s13, 128, %s35_s16, [#allocation4]  }
  0x7b   :  { %97 = dma.done.wait [#allocation4], 128  }
  0x7c   :  { %98 = vsyncadd [#allocation4], 4294967168 }
  0x7d   :  { %42 = vsyncpa [#allocation3], 1 }
  0x7e   :  { %43 = vsyncpa [#allocation4], 1 }

</bundles_post_ra>
